<compile_context>
chip_gen: v7x
topology: tpu7x:2x2x1
jax: 0.10.0
libtpu: 0.0.40
codegen_flags: <defaults>
</compile_context>

<pallas_src>
import numpy as np
import jax
import jax.numpy as jnp
from jax.experimental import pallas as pl
from jax.experimental.pallas import tpu as pltpu

LANE = 128
SUBLANE = 8


def _transition_kernel(x_ref, w_ref, s_ref, out_ref):
    """Fused 1x1 conv (no bias) + ReLU + 2x2 average pool.

    x_ref   : (1, Cin, P)  f32 -- P = 2*tHo*W input pixels (whole row-pairs,
                                  row-major), lane-dense
    w_ref   : (Cout, Cin)  f32 -- conv weight, VMEM-resident across the grid
    s_ref   : (P, Q)       f32 -- constant pooling matrix (0.25 one-hot),
                                  Q = tHo*Wo, VMEM-resident across the grid
    out_ref : (1, Cout, Q) f32 -- pooled output pixels, lane-dense
    """
    h = jnp.dot(w_ref[...], x_ref[0], preferred_element_type=jnp.float32)
    h = jnp.maximum(h, 0.0)                       # ReLU
    out_ref[0] = jnp.dot(h, s_ref[...],
                         preferred_element_type=jnp.float32
                         ).astype(out_ref.dtype)  # 2x2 average pool (MXU)


def _divisors_desc(n):
    return [d for d in range(n, 0, -1) if n % d == 0]


def _block_footprint_bytes(t_ho, W, Wo, cin_pad, cout_pad):
    """VMEM bytes for one grid step (double-buffered x/out + pooling matrix)."""
    P = 2 * t_ho * W
    Q = t_ho * Wo
    P_pad = -(-P // LANE) * LANE
    Q_pad = -(-Q // LANE) * LANE
    return 4 * (2 * cin_pad * P_pad + 2 * cout_pad * Q_pad + 2 * P_pad * Q_pad)


def _pick_row_tile(N, Ho, Wo, W, cin_pad, cout_pad, budget_bytes):
    """Largest output-row tile whose blocks are (8,128)-legal and fit budget."""
    legal = [t for t in _divisors_desc(Ho) if t == Ho or (t * Wo) % LANE == 0]
    fitting = [t for t in legal
               if _block_footprint_bytes(t, W, Wo, cin_pad, cout_pad) <= budget_bytes]
    if fitting:
        t = fitting[0]
        if N * (Ho // t) < 2:                 # give the 2nd TensorCore work
            multi = [u for u in fitting if Ho // u >= 2]
            if multi:
                t = multi[0]
        return t
    # nothing fits the target budget: take the cheapest legal tile and let the
    # caller raise vmem_limit_bytes accordingly.
    return min(legal, key=lambda u: _block_footprint_bytes(u, W, Wo, cin_pad, cout_pad))


def transition_forward(x_nchw, w):
    """PyTorch-equivalent forward: avg_pool2d(ReLU(Conv1x1(x)), 2).

    x_nchw : (N, Cin, H, W) float32
    w      : (Cout, Cin) or (Cout, Cin, 1, 1) float32 conv weight
    returns: (N, Cout, H//2, W//2) float32 (NCHW)
    """
    N, Cin, H, W = x_nchw.shape
    Cout = w.shape[0]
    w2 = jnp.reshape(w, (Cout, Cin))
    assert H % 2 == 0 and W % 2 == 0, "avg_pool2d(2) needs even H, W"
    Ho, Wo = H // 2, W // 2

    cin_pad = -(-Cin // SUBLANE) * SUBLANE
    cout_pad = -(-Cout // SUBLANE) * SUBLANE

    budget = 10 * 1024 * 1024                  # per-step working-set target
    t_ho = _pick_row_tile(N, Ho, Wo, W, cin_pad, cout_pad, budget)
    P = 2 * t_ho * W                           # input pixels per grid step
    Q = t_ho * Wo                              # output pixels per grid step

    # Constant pooling matrix: local input pixel p -> local output pixel q,
    # weight 0.25 (identical pattern for every row-pair tile).
    p_idx = np.arange(P)
    q_idx = ((p_idx // W) // 2) * Wo + (p_idx % W) // 2
    spool = np.zeros((P, Q), np.float32)
    spool[p_idx, q_idx] = 0.25
    spool = jnp.asarray(spool)

    x_flat = x_nchw.reshape(N, Cin, H * W)     # free: contiguous dim merge

    foot = _block_footprint_bytes(t_ho, W, Wo, cin_pad, cout_pad)
    vmem_limit = int(max(32 * 1024 * 1024, foot + (4 << 20)))

    out_flat = pl.pallas_call(
        _transition_kernel,
        out_shape=jax.ShapeDtypeStruct((N, Cout, Ho * Wo), x_nchw.dtype),
        grid_spec=pltpu.PrefetchScalarGridSpec(
            num_scalar_prefetch=0,
            grid=(N, Ho // t_ho),
            in_specs=[
                pl.BlockSpec((1, Cin, P), lambda n, r: (n, 0, r)),
                pl.BlockSpec((Cout, Cin), lambda n, r: (0, 0)),   # resident w
                pl.BlockSpec((P, Q), lambda n, r: (0, 0)),        # resident pool mat
            ],
            out_specs=pl.BlockSpec((1, Cout, Q), lambda n, r: (n, 0, r)),
        ),
        compiler_params=pltpu.CompilerParams(
            dimension_semantics=("parallel", "parallel"),
            vmem_limit_bytes=vmem_limit),
    )(x_flat, w2, spool)

    return out_flat.reshape(N, Cout, Ho, Wo)   # free: contiguous dim split


# ---------------------- pure-JAX reference (for checking) --------------------
def _ref_forward(x_nchw, w):
    h = jnp.einsum('nchw,oc->nohw', x_nchw, jnp.reshape(w, (w.shape[0], -1)))
    h = jnp.maximum(h, 0.0)
    N, Cout, H, W = h.shape
    h = h.reshape(N, Cout, H // 2, 2, W // 2, 2)
    return h.mean(axis=(3, 5))


if __name__ == "__main__":
    # Shapes consistent with the module: batch=2, in_planes=4, out_planes=8,
    # spatial 16x16.
    batch, in_planes, out_planes, H, W = 2, 4, 8, 16, 16

    key = jax.random.PRNGKey(0)
    kx, kw = jax.random.split(key)
    x = jax.random.normal(kx, (batch, in_planes, H, W), jnp.float32)
    w = jax.random.normal(kw, (out_planes, in_planes), jnp.float32) * (
        1.0 / (in_planes ** 0.5))

    fwd = jax.jit(transition_forward)
    out = jax.block_until_ready(fwd(x, w))
    assert out.shape == (batch, out_planes, H // 2, W // 2), out.shape

    ref = jax.block_until_ready(_ref_forward(x, w))
    assert jnp.allclose(out, ref, atol=1e-4, rtol=1e-4), "mismatch vs reference"

    print("KERNEL_OK")
</pallas_src>

<mosaic_0001>
module attributes {stable_mosaic.version = 11 : i64} {
  func.func @_transition_kernel(%arg0: i32, %arg1: i32, %arg2: memref<1x4x256xf32, #tpu.memory_space<vmem>>, %arg3: memref<8x4xf32, #tpu.memory_space<vmem>>, %arg4: memref<256x64xf32, #tpu.memory_space<vmem>>, %arg5: memref<1x8x64xf32, #tpu.memory_space<vmem>>) attributes {dimension_semantics = [#tpu.dimension_semantics<parallel>, #tpu.dimension_semantics<parallel>], iteration_bounds = array<i64: 2, 1>, scalar_prefetch = 0 : i64, scratch_operands = 0 : i64, tpu.core_type = #tpu.core_type<tc>, window_params = [{transform_indices = @transform_0, window_bounds = array<i64: 1, 4, 256>}, {pipeline_mode = #tpu.pipeline_mode<synchronous>, transform_indices = @transform_1, window_bounds = array<i64: 8, 4>}, {pipeline_mode = #tpu.pipeline_mode<synchronous>, transform_indices = @transform_2, window_bounds = array<i64: 256, 64>}, {transform_indices = @transform_3, window_bounds = array<i64: 1, 8, 64>}]} {
    %c0 = arith.constant 0 : index
    %c0_0 = arith.constant 0 : index
    %0 = vector.load %arg3[%c0, %c0_0] : memref<8x4xf32, #tpu.memory_space<vmem>>, vector<8x4xf32>
    %c0_1 = arith.constant 0 : index
    %c0_2 = arith.constant 0 : index
    %c0_3 = arith.constant 0 : index
    %1 = vector.load %arg2[%c0_1, %c0_2, %c0_3] : memref<1x4x256xf32, #tpu.memory_space<vmem>>, vector<1x4x256xf32>
    %2 = vector.shape_cast %1 : vector<1x4x256xf32> to vector<4x256xf32>
    %cst = arith.constant dense<0.000000e+00> : vector<8x256xf32>
    %3 = tpu.matmul %0, %2, %cst {dimension_numbers = #tpu.dot_dimension_numbers<[1], [0], [0], [1], [0, 0, 1, 1], [], []>} : vector<8x4xf32>, vector<4x256xf32>, vector<8x256xf32> -> vector<8x256xf32>
    %cst_4 = arith.constant 0.000000e+00 : f32
    %4 = vector.broadcast %cst_4 : f32 to vector<8x256xf32>
    %5 = arith.maximumf %3, %4 : vector<8x256xf32>
    %c0_5 = arith.constant 0 : index
    %c0_6 = arith.constant 0 : index
    %6 = vector.load %arg4[%c0_5, %c0_6] : memref<256x64xf32, #tpu.memory_space<vmem>>, vector<256x64xf32>
    %cst_7 = arith.constant dense<0.000000e+00> : vector<8x64xf32>
    %7 = tpu.matmul %5, %6, %cst_7 {dimension_numbers = #tpu.dot_dimension_numbers<[1], [0], [0], [1], [0, 0, 1, 1], [], []>} : vector<8x256xf32>, vector<256x64xf32>, vector<8x64xf32> -> vector<8x64xf32>
    %c0_8 = arith.constant 0 : index
    %c0_9 = arith.constant 0 : index
    %c0_10 = arith.constant 0 : index
    %8 = vector.load %arg5[%c0_8, %c0_9, %c0_10] : memref<1x8x64xf32, #tpu.memory_space<vmem>>, vector<1x8x64xf32>
    %9 = vector.shape_cast %8 : vector<1x8x64xf32> to vector<8x64xf32>
    %10 = vector.shape_cast %7 : vector<8x64xf32> to vector<1x8x64xf32>
    tpu.vector_store %arg5[%c0_8, %c0_9, %c0_10], %10 {strides = array<i32>} : memref<1x8x64xf32, #tpu.memory_space<vmem>>, vector<1x8x64xf32>,
    return
  }
  func.func @transform_0(%arg0: i32, %arg1: i32) -> (i32, i32, i32) {
    %c0_i32 = arith.constant 0 : i32
    %c0_i32_0 = arith.constant 0 : i32
    return %arg0, %c0_i32, %arg1 : i32, i32, i32
  }
  func.func @transform_1(%arg0: i32, %arg1: i32) -> (i32, i32) {
    %c0_i32 = arith.constant 0 : i32
    %c0_i32_0 = arith.constant 0 : i32
    %c0_i32_1 = arith.constant 0 : i32
    return %c0_i32, %c0_i32_0 : i32, i32
  }
  func.func @transform_2(%arg0: i32, %arg1: i32) -> (i32, i32) {
    %c0_i32 = arith.constant 0 : i32
    %c0_i32_0 = arith.constant 0 : i32
    %c0_i32_1 = arith.constant 0 : i32
    return %c0_i32, %c0_i32_0 : i32, i32
  }
  func.func @transform_3(%arg0: i32, %arg1: i32) -> (i32, i32, i32) {
    %c0_i32 = arith.constant 0 : i32
    %c0_i32_0 = arith.constant 0 : i32
    return %arg0, %c0_i32, %arg1 : i32, i32, i32
  }
}

</mosaic_0001>

<bundles_post_ra>
// kernel: transition_forward.1
= control target key start
LH: loop header
LB: loop body
LE: loop exit
PB: predicated region body
PF: predicated region fallthrough
CT: control target
= control target key end

     0   :  { %8 = vsyncpa [#allocation3], 0  ;;  %s702_s12 = smov 0   ;;  %s704_s13 = smov 0   ;;  %s790_s0 = inlined_call_operand.vmem [shape: f32[2,4,256], index: 0, kind: input, shape index: {}]   ;;  %s791_s1 = inlined_call_operand.vmem [shape: f32[8,4], index: 1, kind: input, shape index: {}]   ;;  %s792_s2 = inlined_call_operand.hbm [shape: f32[256,64], index: 2, kind: input, shape index: {}]   ;;  %s793_s3 = inlined_call_operand.vmem [shape: f32[2,8,64], index: 3, kind: output, shape index: {}]  }
   0x1   :  { %s706_s14 = smov 0  }
   0x2 LB: > { %s500_s15 = sadd.s32 4294967295, %s676_s14   ;;  %s26_s16 = sadd.s32 1, %s672_s13  ;;  %s676_s14 = sphi %s706_s14, %s14_s14   ;;  %s672_s13 = sphi %s704_s13, %s803_s13   ;;  %s668_s12 = sphi %s702_s12, %s802_s12  }
   0x3   : > { %p28_p0 = scmp.ge.s32.totalorder %s26_s16, 2  ;;  %p502_p1 = scmp.ge.s32.totalorder %s676_s14, 1 }
   0x4   : > { %p129_p2 = scmp.lt.s32.totalorder %s676_s14, 3  ;;  %p727_p4 = scmp.eq.s32.totalorder %s500_s15, 0 }
   0x5   : > { %s805_s16 = smov (%p28_p0, %s26_s16), 0  ;;  %s678_s19 = smov [#allocation2]  }
   0x6   : > { %p723_p3 = pnand %p502_p1, %p129_p2  ;;  %s144_s20 = sshll.u32 %s678_s19, 4  ;;  %s145_s20 = int_to_ptr.vmem [resolvable:$true] %s144_s20 }
   0x7   : > { %s798_s18 = scalar_select %p727_p4, 1, 0 }
   0x8   : > { %s797_s17 = scalar_select %p723_p3, 1, 0 }
   0x9   : > { %p587_p5 = pneg %p723_p3  ;;  %s622_s24 = scalar_lea.hbm %s792_s2, 4096 }
   0xa   : > { %p623_p7 = scmp.ne.s32.totalorder %s792_s2, %s622_s24  ;;  %p629_p11 = scmp.lt.u32.totalorder %s622_s24, %s792_s2 }
   0xb   : > { %p735_p6 = pnand %p727_p4, %p587_p5 }
   0xd   : > { %p624_p8 = pneg %p735_p6 }
   0xf   : > { %p625_p9 = pnand %p624_p8, %p623_p7 }
  0x11   : > { %p626_p10 = pneg %p625_p9 }
  0x13   : > { %p631_p12 = pnand %p629_p11, %p626_p10 }
  0x15   : > { %634 = shalt.err (!%p631_p12)
}
  0x16   : > { %s635_s29 = scalar_lea.vmem %s145_s20, 4096  ;;  %p643_p2 = scmp.lt.s32.totalorder %s145_s20, %s145_s20 }
  0x17   : > { %p636_p13 = scmp.ne.s32.totalorder %s145_s20, %s635_s29  ;;  %p644_p5 = scmp.lt.s32.totalorder %s635_s29, %s635_s29 }
  0x19   : > { %p638_p0 = pnand %p636_p13, %p624_p8  ;;  %p645_p4 = por %p644_p5, %p643_p2 }
  0x1b   : > { %p639_p1 = pneg %p638_p0 }
  0x1d   : > { %p646_p3 = pnand %p645_p4, %p639_p1 }
  0x1f   : > { %649 = shalt.err (!%p646_p3)
}
  0x20   : > { %s679_s30 = smov 128   ;;  %s680_s4 = smov 8  }
  0x21   : > { %590 = dma.hbm_to_vmem [thread:$0]  (!%p735_p6), %s792_s2, 4096, %s145_s20, [#allocation3], %s679_s30, %s679_s30, %s680_s4  }
  0x22   : > { %p800_p7 = scmp.ne.s32.totalorder %s797_s17, 0 }
  0x23   : > { %p801_p9 = scmp.ne.s32.totalorder (!%p800_p7), %s798_s18, 0 }
  0x24   : > { %173 = sbr.rel (%p800_p7) target bundleno = 486 (0x1e6), region = 32 }
  0x2b   : > { %663 = dma.done.wait (%p801_p9), [#allocation3], 4096  }
  0x2c   : > { %665 = vsyncadd (%p801_p9), [#allocation3], 4294963200  ;;  %p204_p3 = scmp.lt.s32.totalorder %s668_s12, 1  ;;  %v681_v0 = vmov 0.0   ;;  %vm228_vm0 = vcmask 1043456   ;;  %v220_v2 = vld [vmem:[%s791_s1] sm:$0xff] }
  0x2d   : > { %297 = vmatprep.mubr.f32.mxu0 %v681_v0  ;;  %v322_v3 = vld [vmem:[#allocation2 + $0x80] sm:$0xff]  ;;  %v323_v5 = vld [vmem:[#allocation2 + $0x88] sm:$0xff]  ;;  %vm224_vm1 = vcmask 31744   ;;  %v324_v10 = vld [vmem:[#allocation2 + $0x90] sm:$0xff]  ;;  %vm408_vm2 = vcmask 523264  }
  0x2e   : > { %s807_s12 = smov (!%p204_p3, %s668_s12), 1  ;;  %v306_v6 = vld [vmem:[#allocation2] sm:$0xff]  ;;  %v307_v7 = vld [vmem:[#allocation2 + $0x8] sm:$0xff]  ;;  %v551_v8 = vpack.c.bf16 %v323_v5, %v322_v3  ;;  %v325_v11 = vld [vmem:[#allocation2 + $0x98] sm:$0xff] }
  0x2f   : > { %s515_s7 = sshll.u32 %s807_s12, 3  ;;  %v553_v9 = vpack.c.bf16 %v307_v7, %v306_v6  ;;  %v308_v12 = vld [vmem:[#allocation2 + $0x10] sm:$0xff]  ;;  %v555_v13 = vpack.c.bf16 %v325_v11, %v324_v10  ;;  %v309_v14 = vld [vmem:[#allocation2 + $0x18] sm:$0xff]  ;;  %v326_v15 = vld [vmem:[#allocation2 + $0xa0] sm:$0xff] }
  0x30   : > { %s211_s10 = scalar_lea.vmem %s790_s0, %s515_s7  ;;  %v327_v16 = vld [vmem:[#allocation2 + $0xa8] sm:$0xff]  ;;  %552 = vmatprep.subr.bf16.mxu1 %v551_v8  ;;  %v557_v17 = vpack.c.bf16 %v309_v14, %v308_v12  ;;  %v310_v19 = vld [vmem:[#allocation2 + $0x20] sm:$0xff]  ;;  %v328_v21 = vld [vmem:[#allocation2 + $0xb0] sm:$0xff]  ;;  %s219_s19 = scalar_lea.vmem %s793_s3, %s515_s7 }
  0x31   : > { %v221_v1 = vld [vmem:[%s211_s10] sm:$0xff]  ;;  %554 = vmatpush3.bf16.msra.mxu1 %v553_v9  ;;  %v559_v18 = vpack.c.bf16 %v327_v16, %v326_v15  ;;  %v311_v20 = vld [vmem:[#allocation2 + $0x28] sm:$0xff]  ;;  %v329_v22 = vld [vmem:[#allocation2 + $0xb8] sm:$0xff] }
  0x32   : > { %v223_v4 = vcombine.high %v221_v1, %v221_v1  ;;  %556 = vmatprep.subr.bf16.mxu1 %v555_v13  ;;  %v561_v23 = vpack.c.bf16 %v311_v20, %v310_v19  ;;  %v563_v24 = vpack.c.bf16 %v329_v22, %v328_v21  ;;  %v312_v25 = vld [vmem:[#allocation2 + $0x30] sm:$0xff]  ;;  %v313_v26 = vld [vmem:[#allocation2 + $0x38] sm:$0xff]  ;;  %v330_v27 = vld [vmem:[#allocation2 + $0xc0] sm:$0xff] }
  0x33   : > { %v331_v28 = vld [vmem:[#allocation2 + $0xc8] sm:$0xff]  ;;  %v565_v29 = vpack.c.bf16 %v313_v26, %v312_v25  ;;  %v314_v31 = vld [vmem:[#allocation2 + $0x40] sm:$0xff]  ;;  %v332_v33 = vld [vmem:[#allocation2 + $0xd0] sm:$0xff] }
  0x34   : > { %510 = vmatprep.subr.msk.mxu0 %vm228_vm0, %v223_v4  ;;  %v567_v30 = vpack.c.bf16 %v331_v28, %v330_v27  ;;  %v315_v32 = vld [vmem:[#allocation2 + $0x48] sm:$0xff]  ;;  %v333_v34 = vld [vmem:[#allocation2 + $0xd8] sm:$0xff]  ;;  %v316_v37 = vld [vmem:[#allocation2 + $0x50] sm:$0xff] }
  0x35   : > { %511 = vmatpush1.msk.msra.mxu0 %vm228_vm0, %v221_v1  ;;  %558 = vmatpush3.bf16.msra.mxu1 %v557_v17  ;;  %v569_v35 = vpack.c.bf16 %v315_v32, %v314_v31  ;;  %v571_v36 = vpack.c.bf16 %v333_v34, %v332_v33  ;;  %v317_v38 = vld [vmem:[#allocation2 + $0x58] sm:$0xff]  ;;  %v334_v39 = vld [vmem:[#allocation2 + $0xe0] sm:$0xff]  ;;  %v335_v40 = vld [vmem:[#allocation2 + $0xe8] sm:$0xff] }
  0x36   : > { %512 = vmatmul.mubr.msk.f32.vlgmr.msra.gmra.mrb[0].mxu0 %vm224_vm1, %v220_v2  ;;  %560 = vmatprep.subr.bf16.mxu1 %v559_v18  ;;  %v573_v41 = vpack.c.bf16 %v317_v38, %v316_v37  ;;  %v575_v42 = vpack.c.bf16 %v335_v40, %v334_v39  ;;  %v318_v43 = vld [vmem:[#allocation2 + $0x60] sm:$0xff]  ;;  %v319_v44 = vld [vmem:[#allocation2 + $0x68] sm:$0xff]  ;;  %v336_v46 = vld [vmem:[#allocation2 + $0xf0] sm:$0xff] }
  0x37   : > { %v577_v45 = vpack.c.bf16 %v319_v44, %v318_v43  ;;  %v337_v47 = vld [vmem:[#allocation2 + $0xf8] sm:$0xff]  ;;  %v320_v49 = vld [vmem:[#allocation2 + $0x70] sm:$0xff] }
  0x38   : > { %v579_v48 = vpack.c.bf16 %v337_v47, %v336_v46  ;;  %v321_v50 = vld [vmem:[#allocation2 + $0x78] sm:$0xff] }
  0x39   : > { %562 = vmatpush3.bf16.msra.mxu1 %v561_v23  ;;  %v581_v51 = vpack.c.bf16 %v321_v50, %v320_v49 }
  0x3a   : > { %564 = vmatprep.subr.bf16.mxu1 %v563_v24 }
  0x3d   : > { %566 = vmatpush3.bf16.msra.mxu1 %v565_v29 }
  0x3e   : > { %568 = vmatprep.subr.bf16.mxu1 %v567_v30 }
  0x41   : > { %570 = vmatpush3.bf16.msra.mxu1 %v569_v35 }
  0x42   : > { %572 = vmatprep.subr.bf16.mxu1 %v571_v36 }
  0x45   : > { %574 = vmatpush3.bf16.msra.mxu1 %v573_v41 }
  0x46   : > { %576 = vmatprep.subr.bf16.mxu1 %v575_v42 }
  0x49   : > { %578 = vmatpush3.bf16.msra.mxu1 %v577_v45 }
  0x4a   : > { %580 = vmatprep.subr.bf16.mxu1 %v579_v48 }
  0x4d   : > { %582 = vmatpush3.bf16.msra.mxu1 %v581_v51 }
 0x109   : > { %v299_v52 = vpop.f32.mrb[0].mxu0 }
 0x10a   : > { %v301_v53 = vpop.f32.mrb[1].mxu0  ;;  %v304_v55 = vmax.f32 %v299_v52, 0.0 }
 0x10b   : > { %v305_v54 = vmax.f32 %v301_v53, 0.0 }
 0x10d   : > { %402 = vmatprep.mubr.f32.mxu1 %v305_v54 }
 0x10e   : > { %403 = vmatmul.mubr.f32.vlgmr.msra.gmra.mrb[0].mxu1 %v304_v55 }
 0x1e1   : > { %v548_v56 = vpop.f32.mrb[0].mxu1 }
 0x1e2   : > { %v549_v57 = vpop.f32.mrb[1].mxu1 }
 0x1e3   : > { %v550_v58 = vadd.f32 %v549_v57, %v548_v56 }
 0x1e5   : > { %409 = vst.msk [vmem:[%s219_s19] sm:$0xff] %vm408_vm2, %v550_v58 }
 0x1e6 PF: > { %s14_s14 = sadd.s32 1, %s676_s14   ;;  %s802_s12 = smov %s672_s13 }
 0x1e7   : > { %p11_p4 = scmp.ge.s32.totalorder %s14_s14, 4   ;;  %s803_s13 = smov %s805_s16 }
 0x1e9   :  { %13 = sbr.rel (!%p11_p4) target bundleno = 2 (0x2), region = 67 }
 0x1f0   :  { %435 = vsyncpa [#allocation3], 1 }
 0x1f1   :  { %437 = vsyncpa [#allocation3 + $0x1], 1 }

</bundles_post_ra>
